<compile_context>
chip_gen: v7x
topology: tpu7x:2x2x1
jax: 0.10.0
libtpu: 0.0.40
codegen_flags: <defaults>
</compile_context>

<pallas_src>
import functools

import jax
import jax.numpy as jnp
from jax.experimental import pallas as pl
from jax.experimental.pallas import tpu as pltpu

_LN_EPS = 1e-5     # torch nn.LayerNorm default
_BN_EPS = 1e-5     # torch nn.BatchNorm1d default
_ADD_EPS = 1e-12   # Add module epsilon

# Column layout of the packed per-channel parameter array `vecs` (rows_pad, 10):
#   0: proj bias (BN fused)   1: ln1 gamma   2: ln1 beta   3: [k|q] bias
#   4: v bias                 5: attn proj bias (scaled by add1_w0)
#   6: ln2 gamma              7: ln2 beta
#   8: ffn1 bias              9: ffn2 bias (scaled by add2_w0)


# --------------------------------------------------------------------------
# Small in-kernel helpers
# --------------------------------------------------------------------------
def _elu(x):
    # torch nn.ELU(alpha=1): x if x > 0 else exp(x) - 1
    return jnp.where(x > 0, x, jnp.exp(jnp.minimum(x, 0.0)) - 1.0)


def _layernorm_c(x, gamma, beta):
    # x: (C, N); normalize each column over the channel (sublane) axis,
    # matching LayerNorm(dim) applied after transpose(-1, -2) in PyTorch.
    mu = jnp.mean(x, axis=0, keepdims=True)
    var = jnp.mean(jnp.square(x - mu), axis=0, keepdims=True)
    return (x - mu) * jax.lax.rsqrt(var + _LN_EPS) * gamma + beta


def _attn_tail(h, ctx, v_w, attn_pw, ffn1_w, ffn2_w, vecs, a_h, a_x1, xn=None):
    """Everything after the context vector is known: v, attention apply,
    output projection (+ folded add1_w0), add1, LN2, FFN (+ folded add2_w0),
    add2.  `h`/`ctx` are f32; matmul operands are cast to bf16."""
    d_out = v_w.shape[0]
    ffn_dim = ffn1_w.shape[0]
    if xn is None:
        xn = _layernorm_c(h, vecs[0:d_out, 1:2], vecs[0:d_out, 2:3])
    v = jnp.dot(v_w, xn.astype(jnp.bfloat16), preferred_element_type=jnp.float32)
    v = v + vecs[0:d_out, 4:5]
    attn_in = (jnp.maximum(v, 0.0) * ctx).astype(jnp.bfloat16)
    attn = jnp.dot(attn_pw, attn_in, preferred_element_type=jnp.float32)
    attn = attn + vecs[0:d_out, 5:6]                   # already scaled by add1_w0
    x1 = attn + a_h * h                                # add1
    xn2 = _layernorm_c(x1, vecs[0:d_out, 6:7], vecs[0:d_out, 7:8])
    f = jnp.dot(ffn1_w, xn2.astype(jnp.bfloat16),
                preferred_element_type=jnp.float32) + vecs[0:ffn_dim, 8:9]
    f = _elu(f)
    f = jnp.dot(ffn2_w, f.astype(jnp.bfloat16),
                preferred_element_type=jnp.float32) + vecs[0:d_out, 9:10]
    return f + a_x1 * x1                               # add2 (ffn part pre-scaled)


# --------------------------------------------------------------------------
# Kernel 1: single fused kernel (whole sequence per grid step) — small N path
# --------------------------------------------------------------------------
def lfel_fused_kernel(x_ref, proj_w_ref, kq_w_ref, v_w_ref, attn_pw_ref,
                      ffn1_w_ref, ffn2_w_ref, vecs_ref, add_ref, out_ref,
                      *, num_heads):
    d_out = proj_w_ref.shape[0]
    vecs = vecs_ref[...]

    # ---- proj: Conv1x1 (BN fused) + ELU ---------------------------------
    x = x_ref[...].astype(jnp.bfloat16)                             # (d_in, N)
    h = jnp.dot(proj_w_ref[...], x, preferred_element_type=jnp.float32)
    h = _elu(h + vecs[0:d_out, 0:1])                                # (d_out, N)

    # ---- norm1 + fused [k|q] projection ---------------------------------
    xn = _layernorm_c(h, vecs[0:d_out, 1:2], vecs[0:d_out, 2:3])
    kq = jnp.dot(kq_w_ref[...], xn.astype(jnp.bfloat16),
                 preferred_element_type=jnp.float32) + vecs[:, 3:4]
    k = kq[0:d_out, :]                                              # (H*hd, N)
    q = kq[d_out:d_out + num_heads, :]                              # (H, N)

    # ---- softmax over the sequence; ctx = sum_n k * softmax(q) ----------
    m = jnp.max(q, axis=-1, keepdims=True)
    e = jnp.exp(q - m)
    l = jnp.sum(e, axis=-1, keepdims=True)
    if num_heads == 1:
        ctx = jnp.sum(k * e, axis=-1, keepdims=True) * pl.reciprocal(l, approx=True)
    else:
        hd = d_out // num_heads
        k3 = k.reshape(num_heads, hd, k.shape[-1])
        ctx3 = jnp.sum(k3 * e[:, None, :], axis=-1, keepdims=True)
        ctx3 = ctx3 * pl.reciprocal(l, approx=True)[:, :, None]
        ctx = ctx3.reshape(d_out, 1)

    out = _attn_tail(h, ctx, v_w_ref[...], attn_pw_ref[...], ffn1_w_ref[...],
                     ffn2_w_ref[...], vecs, add_ref[0], add_ref[1], xn=xn)
    out_ref[...] = out.astype(out_ref.dtype)


# --------------------------------------------------------------------------
# Kernels 2a/2b: N-tiled two-pass path (online softmax) — large N path
# --------------------------------------------------------------------------
def lfel_pass1_kernel(x_ref, proj_w_ref, kq_w_ref, vecs_ref, h_ref, ctx_ref,
                      m_sc, l_sc, sk_sc, *, num_heads):
    """Per N-tile: proj+ELU (spilled to HBM), LN1, k/q projection, and the
    online-softmax accumulation of the per-head context vector."""
    d_out = proj_w_ref.shape[0]
    vecs = vecs_ref[...]
    n = pl.program_id(1)
    n_last = pl.num_programs(1) - 1

    @pl.when(n == 0)
    def _():
        m_sc[...] = jnp.full_like(m_sc, -jnp.inf)
        l_sc[...] = jnp.zeros_like(l_sc)
        sk_sc[...] = jnp.zeros_like(sk_sc)

    x = x_ref[...].astype(jnp.bfloat16)                             # (d_in, tn)
    h = jnp.dot(proj_w_ref[...], x, preferred_element_type=jnp.float32)
    h = _elu(h + vecs[0:d_out, 0:1])
    h_ref[...] = h                                                  # spill to HBM

    xn = _layernorm_c(h, vecs[0:d_out, 1:2], vecs[0:d_out, 2:3])
    kq = jnp.dot(kq_w_ref[...], xn.astype(jnp.bfloat16),
                 preferred_element_type=jnp.float32) + vecs[:, 3:4]
    k = kq[0:d_out, :]
    q = kq[d_out:d_out + num_heads, :]

    m_prev = m_sc[...]
    m_new = jnp.maximum(m_prev, jnp.max(q, axis=-1, keepdims=True))
    alpha = jnp.exp(m_prev - m_new)                                 # (H, 1)
    e = jnp.exp(q - m_new)                                          # (H, tn)
    l_sc[...] = alpha * l_sc[...] + jnp.sum(e, axis=-1, keepdims=True)

    if num_heads == 1:
        sk_tile = jnp.sum(k * e, axis=-1, keepdims=True)            # (d_out, 1)
        alpha_rows = alpha
    else:
        hd = d_out // num_heads
        k3 = k.reshape(num_heads, hd, k.shape[-1])
        sk_tile = jnp.sum(k3 * e[:, None, :], axis=-1,
                          keepdims=True).reshape(d_out, 1)
        alpha_rows = jnp.repeat(alpha, hd, axis=0)
    sk_sc[...] = alpha_rows * sk_sc[...] + sk_tile
    m_sc[...] = m_new

    @pl.when(n == n_last)
    def _():
        if num_heads == 1:
            l_rows = l_sc[...]
        else:
            l_rows = jnp.repeat(l_sc[...], d_out // num_heads, axis=0)
        ctx_ref[...] = sk_sc[...] * pl.reciprocal(l_rows, approx=True)


def lfel_pass2_kernel(h_ref, ctx_ref, v_w_ref, attn_pw_ref, ffn1_w_ref,
                      ffn2_w_ref, vecs_ref, add_ref, out_ref):
    out = _attn_tail(h_ref[...], ctx_ref[...], v_w_ref[...], attn_pw_ref[...],
                     ffn1_w_ref[...], ffn2_w_ref[...], vecs_ref[...],
                     add_ref[0], add_ref[1])
    out_ref[...] = out.astype(out_ref.dtype)


# --------------------------------------------------------------------------
# VMEM budgeting helpers
# --------------------------------------------------------------------------
def _vmem_budget_bytes():
    cap = 64 * 1024 * 1024                      # conservative default (v7x)
    try:
        info = pltpu.get_tpu_info()
        cap = int(getattr(info, "vmem_capacity_bytes", cap))
    except Exception:
        pass
    # Leave headroom for Mosaic internal scratch / double-buffered weights.
    return max(24 * 1024 * 1024, min((cap * 3) // 4, 100 * 1024 * 1024))


def _weight_bytes(d_in, d_out, ffn_dim, rows_pad):
    wb = 2 * (d_out * d_in + rows_pad * d_out + 2 * d_out * d_out
              + 2 * ffn_dim * d_out)            # bf16 weights
    wb += 4 * rows_pad * 16                     # vecs (f32, lane-padded)
    return wb


def _fused_vmem_estimate(d_in, d_out, ffn_dim, rows_pad, n_cols):
    per_col = 4 * (3 * d_in + 14 * d_out + rows_pad + 3 * ffn_dim)
    return per_col * n_cols + 4 * _weight_bytes(d_in, d_out, ffn_dim, rows_pad) \
        + (2 << 20)


def _tiled_vmem_estimate(d_in, d_out, ffn_dim, rows_pad, tn):
    per_col_p1 = 4 * (3 * d_in + 8 * d_out + rows_pad)
    per_col_p2 = 4 * (14 * d_out + 3 * ffn_dim)
    return max(per_col_p1, per_col_p2) * tn \
        + 4 * _weight_bytes(d_in, d_out, ffn_dim, rows_pad) + (2 << 20)


def _clamp_vmem(est, budget):
    return int(min(max(est, 16 * 1024 * 1024), budget))


def _pick_n_tile(n_total, budget, d_in, d_out, ffn_dim, rows_pad):
    best = 128
    cand = 128
    while cand <= min(n_total, 4096):
        if (n_total % cand == 0
                and _tiled_vmem_estimate(d_in, d_out, ffn_dim, rows_pad, cand)
                <= budget):
            best = cand
        cand += 128
    return best


def _const_spec(a):
    nd = a.ndim
    return pl.BlockSpec(a.shape, lambda *_: (0,) * nd)


# --------------------------------------------------------------------------
# Wrappers
# --------------------------------------------------------------------------
def _forward_fused(x, params, num_heads, out_dtype, budget):
    B, d_in, N = x.shape
    d_out = params["v_w"].shape[0]
    ffn_dim = params["ffn1_w"].shape[0]
    rows_pad = params["kq_w"].shape[0]
    weights = [params["proj_w"], params["kq_w"], params["v_w"],
               params["attn_pw"], params["ffn1_w"], params["ffn2_w"],
               params["vecs"]]
    in_specs = [pl.BlockSpec((None, d_in, N), lambda b: (b, 0, 0))]
    in_specs += [_const_spec(a) for a in weights]
    in_specs += [pl.BlockSpec(memory_space=pltpu.MemorySpace.SMEM)]
    out_spec = pl.BlockSpec((None, d_out, N), lambda b: (b, 0, 0))
    est = _fused_vmem_estimate(d_in, d_out, ffn_dim, rows_pad, N)
    # TODO(synk): for tiny N and large B, widen the per-step batch block to
    # amortize per-grid-step overhead.
    return pl.pallas_call(
        functools.partial(lfel_fused_kernel, num_heads=num_heads),
        out_shape=jax.ShapeDtypeStruct((B, d_out, N), out_dtype),
        grid=(B,),
        in_specs=in_specs,
        out_specs=out_spec,
        compiler_params=pltpu.CompilerParams(
            dimension_semantics=("parallel",),
            vmem_limit_bytes=_clamp_vmem(est, budget)),
    )(x, *weights, params["add_sc"])


def _forward_tiled(x, params, num_heads, n_tile, out_dtype, budget):
    B, d_in, N = x.shape
    d_out = params["v_w"].shape[0]
    ffn_dim = params["ffn1_w"].shape[0]
    rows_pad = params["kq_w"].shape[0]
    assert N % n_tile == 0 and n_tile % 128 == 0
    nN = N // n_tile
    vm = _clamp_vmem(_tiled_vmem_estimate(d_in, d_out, ffn_dim, rows_pad,
                                          n_tile), budget)

    # ---- pass 1: proj+ELU (spilled h), LN1, k/q, online-softmax ctx -----
    p1_weights = [params["proj_w"], params["kq_w"], params["vecs"]]
    p1_in = [pl.BlockSpec((None, d_in, n_tile), lambda b, n: (b, 0, n))]
    p1_in += [_const_spec(a) for a in p1_weights]
    p1_out = (pl.BlockSpec((None, d_out, n_tile), lambda b, n: (b, 0, n)),
              pl.BlockSpec((None, d_out, 1), lambda b, n: (b, 0, 0)))
    h_arr, ctx = pl.pallas_call(
        functools.partial(lfel_pass1_kernel, num_heads=num_heads),
        out_shape=(jax.ShapeDtypeStruct((B, d_out, N), jnp.float32),
                   jax.ShapeDtypeStruct((B, d_out, 1), jnp.float32)),
        grid=(B, nN),
        in_specs=p1_in,
        out_specs=p1_out,
        scratch_shapes=[pltpu.VMEM((num_heads, 1), jnp.float32),
                        pltpu.VMEM((num_heads, 1), jnp.float32),
                        pltpu.VMEM((d_out, 1), jnp.float32)],
        compiler_params=pltpu.CompilerParams(
            dimension_semantics=("parallel", "arbitrary"),
            vmem_limit_bytes=vm),
    )(x, *p1_weights)

    # ---- pass 2: fully parallel per-tile tail ----------------------------
    p2_weights = [params["v_w"], params["attn_pw"], params["ffn1_w"],
                  params["ffn2_w"], params["vecs"]]
    p2_in = [pl.BlockSpec((None, d_out, n_tile), lambda b, n: (b, 0, n)),
             pl.BlockSpec((None, d_out, 1), lambda b, n: (b, 0, 0))]
    p2_in += [_const_spec(a) for a in p2_weights]
    p2_in += [pl.BlockSpec(memory_space=pltpu.MemorySpace.SMEM)]
    out_spec = pl.BlockSpec((None, d_out, n_tile), lambda b, n: (b, 0, n))
    return pl.pallas_call(
        lfel_pass2_kernel,
        out_shape=jax.ShapeDtypeStruct((B, d_out, N), out_dtype),
        grid=(B, nN),
        in_specs=p2_in,
        out_specs=out_spec,
        compiler_params=pltpu.CompilerParams(
            dimension_semantics=("parallel", "parallel"),
            vmem_limit_bytes=vm),
    )(h_arr, ctx, *p2_weights, params["add_sc"])


def lfel_forward(x_ncw, params, *, num_heads=1, n_tile=None):
    """x_ncw: (B, d_in, N) in the PyTorch Conv1d layout; returns (B, d_out, N).

    n_tile=None auto-dispatches: single fused kernel when the whole sequence
    fits the per-generation VMEM budget, otherwise the two-pass N-tiled path.
    """
    B, d_in, N = x_ncw.shape
    d_out = params["v_w"].shape[0]
    ffn_dim = params["ffn1_w"].shape[0]
    rows_pad = params["kq_w"].shape[0]
    assert d_out % num_heads == 0
    assert d_out % 8 == 0, "d_out must be a multiple of 8 (aligned k/v/q slices)"
    # TODO(synk): support N not divisible by 128 by masking the softmax /
    # context reduction over padded columns.
    assert N % 128 == 0, "N must be a multiple of 128 (lane-dense tiles)"

    out_dtype = x_ncw.dtype
    budget = _vmem_budget_bytes()
    if n_tile is None:
        if _fused_vmem_estimate(d_in, d_out, ffn_dim, rows_pad, N) <= budget:
            return _forward_fused(x_ncw, params, num_heads, out_dtype, budget)
        n_tile = _pick_n_tile(N, budget, d_in, d_out, ffn_dim, rows_pad)
    return _forward_tiled(x_ncw, params, num_heads, n_tile, out_dtype, budget)


# --------------------------------------------------------------------------
# Parameter construction (synthetic, matching the PyTorch module shapes) and
# host-side repacking for the kernels.
# --------------------------------------------------------------------------
def init_lfel_params(key, d_in, d_out, num_heads=1):
    assert d_out % num_heads == 0
    head_dim = d_out // num_heads
    ffn_dim = d_out // 4
    blk = 1 + 2 * head_dim
    ks = jax.random.split(key, 10)

    def w(k, shape, scale=0.1):
        return scale * jax.random.normal(k, shape, dtype=jnp.float32)

    # proj: Conv1d(d_in, d_out, 1) + BatchNorm1d (eval running stats) fused.
    proj_w = w(ks[0], (d_out, d_in))
    proj_b = w(ks[1], (d_out,), 0.02)
    bn_gamma = jnp.ones((d_out,), jnp.float32)
    bn_beta = jnp.zeros((d_out,), jnp.float32)
    bn_mean = jnp.zeros((d_out,), jnp.float32)
    bn_var = jnp.ones((d_out,), jnp.float32)
    bn_scale = bn_gamma / jnp.sqrt(bn_var + _BN_EPS)
    proj_w_f = proj_w * bn_scale[:, None]
    proj_b_f = (proj_b - bn_mean) * bn_scale + bn_beta

    # BroadcastAttention qkv_proj: Conv1d(d_out, H*(1+2*head_dim), 1) with
    # per-head channel layout [q | k(d) | v(d)].  Split host-side into a
    # [k | q] matrix (padded to a multiple of 8 rows) used by pass 1 and a
    # v matrix used by the tail, both head-major so sublane slices align.
    qkv_w = w(ks[2], (num_heads * blk, d_out))
    qkv_b = w(ks[3], (num_heads * blk,), 0.02)
    k_rows = [h * blk + 1 + i for h in range(num_heads) for i in range(head_dim)]
    v_rows = [h * blk + 1 + head_dim + i
              for h in range(num_heads) for i in range(head_dim)]
    q_rows = [h * blk for h in range(num_heads)]
    kq_order = jnp.array(k_rows + q_rows, dtype=jnp.int32)
    v_order = jnp.array(v_rows, dtype=jnp.int32)
    n_kq = d_out + num_heads
    rows_pad = ((max(n_kq, ffn_dim, d_out) + 7) // 8) * 8
    kq_w_f = jnp.zeros((rows_pad, d_out), jnp.float32).at[:n_kq].set(qkv_w[kq_order])
    kq_b_f = jnp.zeros((rows_pad,), jnp.float32).at[:n_kq].set(qkv_b[kq_order])
    v_w_f = qkv_w[v_order]
    v_b_f = qkv_b[v_order]

    # attention output projection / FFN convs
    attn_pw = w(ks[4], (d_out, d_out))
    attn_pb = w(ks[5], (d_out,), 0.02)
    ffn1_w = w(ks[6], (ffn_dim, d_out))
    ffn1_b = w(ks[7], (ffn_dim,), 0.02)
    ffn2_w = w(ks[8], (d_out, ffn_dim))
    ffn2_b = w(ks[9], (d_out,), 0.02)

    ln1_g = jnp.ones((d_out,), jnp.float32)
    ln1_b = jnp.zeros((d_out,), jnp.float32)
    ln2_g = jnp.ones((d_out,), jnp.float32)
    ln2_b = jnp.zeros((d_out,), jnp.float32)

    # Add modules: relu + normalization baked in (inference-time constants).
    def norm_add(raw):
        wr = jnp.maximum(raw, 0.0)
        return wr / (jnp.sum(wr) + _ADD_EPS)

    add1 = norm_add(jnp.array([1.25, 0.75], jnp.float32))
    add2 = norm_add(jnp.array([0.60, 1.40], jnp.float32))

    # Fold add1_w0 into the attention output projection and add2_w0 into the
    # second FFN conv (exact rewrites); the remaining scalars go to SMEM.
    attn_pw_f = add1[0] * attn_pw
    attn_pb_f = add1[0] * attn_pb
    ffn2_w_f = add2[0] * ffn2_w
    ffn2_b_f = add2[0] * ffn2_b
    add_sc = jnp.stack([add1[1], add2[1]]).astype(jnp.float32)       # (2,)

    def put(vec):
        o = jnp.zeros((rows_pad,), jnp.float32)
        return o.at[: vec.shape[0]].set(vec)

    vecs = jnp.stack(
        [put(proj_b_f), put(ln1_g), put(ln1_b), kq_b_f, put(v_b_f),
         put(attn_pb_f), put(ln2_g), put(ln2_b), put(ffn1_b), put(ffn2_b_f)],
        axis=1,
    )                                                                # (rows_pad, 10)

    bf = jnp.bfloat16
    return dict(proj_w=proj_w_f.astype(bf), kq_w=kq_w_f.astype(bf),
                v_w=v_w_f.astype(bf), attn_pw=attn_pw_f.astype(bf),
                ffn1_w=ffn1_w.astype(bf), ffn2_w=ffn2_w_f.astype(bf),
                vecs=vecs, add_sc=add_sc)


# --------------------------------------------------------------------------
# Plain-JAX reference (mimics the kernel's bf16 matmul-operand rounding)
# --------------------------------------------------------------------------
def lfel_reference(x_ncw, params, *, num_heads=1):
    hi = jax.lax.Precision.HIGHEST
    x = x_ncw.astype(jnp.float32)
    B, _, N = x.shape
    d_out = params["v_w"].shape[0]
    head_dim = d_out // num_heads
    ffn_dim = params["ffn1_w"].shape[0]
    V = params["vecs"]
    a_h, a_x1 = params["add_sc"][0], params["add_sc"][1]

    def mm(wgt, act):
        return jnp.einsum("oc,bcn->bon", wgt.astype(jnp.float32),
                          act.astype(jnp.bfloat16).astype(jnp.float32),
                          precision=hi)

    def col(j, n):
        return V[:n, j][None, :, None]

    def ln(z, gj, bj):
        mu = z.mean(axis=1, keepdims=True)
        var = ((z - mu) ** 2).mean(axis=1, keepdims=True)
        return (z - mu) / jnp.sqrt(var + _LN_EPS) * col(gj, d_out) + col(bj, d_out)

    h = mm(params["proj_w"], x) + col(0, d_out)
    h = jnp.where(h > 0, h, jnp.exp(jnp.minimum(h, 0.0)) - 1.0)
    xn = ln(h, 1, 2)
    kq = mm(params["kq_w"], xn) + V[:, 3][None, :, None]
    k = kq[:, :d_out]
    q = kq[:, d_out:d_out + num_heads]
    v = mm(params["v_w"], xn) + col(4, d_out)
    s = jax.nn.softmax(q, axis=-1)                                   # (B, H, N)
    k3 = k.reshape(B, num_heads, head_dim, N)
    ctx = jnp.sum(k3 * s[:, :, None, :], axis=-1, keepdims=True)
    ctx = ctx.reshape(B, d_out, 1)
    attn = jnp.maximum(v, 0.0) * ctx
    attn = mm(params["attn_pw"], attn) + col(5, d_out)
    x1 = attn + a_h * h
    xn2 = ln(x1, 6, 7)
    f = mm(params["ffn1_w"], xn2) + col(8, ffn_dim)
    f = jnp.where(f > 0, f, jnp.exp(jnp.minimum(f, 0.0)) - 1.0)
    f = mm(params["ffn2_w"], f) + col(9, d_out)
    return f + a_x1 * x1


# --------------------------------------------------------------------------
if __name__ == "__main__":
    key = jax.random.PRNGKey(0)
    k_param, k_x1, k_x2 = jax.random.split(key, 3)

    B, d_in, d_out, num_heads = 2, 8, 32, 1
    params = init_lfel_params(k_param, d_in, d_out, num_heads=num_heads)

    # Config 1: small N -> single fused kernel path (auto-dispatch).
    N1 = 128
    x1 = jax.random.normal(k_x1, (B, d_in, N1), dtype=jnp.float32)
    y1 = jax.block_until_ready(lfel_forward(x1, params, num_heads=num_heads))
    assert y1.shape == (B, d_out, N1), y1.shape
    assert bool(jnp.all(jnp.isfinite(y1)))
    y1_ref = lfel_reference(x1, params, num_heads=num_heads)
    err1 = float(jnp.max(jnp.abs(y1.astype(jnp.float32) - y1_ref)))
    assert err1 < 2e-2, f"fused path max abs error vs reference: {err1}"

    # Config 2: larger N, force the two-pass N-tiled (online-softmax) path.
    N2, tile = 512, 128
    x2 = jax.random.normal(k_x2, (B, d_in, N2), dtype=jnp.float32)
    y2 = jax.block_until_ready(
        lfel_forward(x2, params, num_heads=num_heads, n_tile=tile))
    assert y2.shape == (B, d_out, N2), y2.shape
    assert bool(jnp.all(jnp.isfinite(y2)))
    y2_ref = lfel_reference(x2, params, num_heads=num_heads)
    err2 = float(jnp.max(jnp.abs(y2.astype(jnp.float32) - y2_ref)))
    assert err2 < 2e-2, f"tiled path max abs error vs reference: {err2}"

    print("KERNEL_OK")
</pallas_src>

<mosaic_0001>
module attributes {stable_mosaic.version = 11 : i64} {
  func.func @lfel_fused_kernel(%arg0: i32, %arg1: memref<1x8x128xf32, #tpu.memory_space<vmem>>, %arg2: memref<32x8xbf16, #tpu.memory_space<vmem>>, %arg3: memref<40x32xbf16, #tpu.memory_space<vmem>>, %arg4: memref<32x32xbf16, #tpu.memory_space<vmem>>, %arg5: memref<32x32xbf16, #tpu.memory_space<vmem>>, %arg6: memref<8x32xbf16, #tpu.memory_space<vmem>>, %arg7: memref<32x8xbf16, #tpu.memory_space<vmem>>, %arg8: memref<40x10xf32, #tpu.memory_space<vmem>>, %arg9: memref<2xf32, #tpu.memory_space<smem>>, %arg10: memref<1x32x128xf32, #tpu.memory_space<vmem>>) attributes {dimension_semantics = [#tpu.dimension_semantics<parallel>], iteration_bounds = array<i64: 2>, scalar_prefetch = 0 : i64, scratch_operands = 0 : i64, tpu.core_type = #tpu.core_type<tc>, window_params = [{transform_indices = @transform_0, window_bounds = array<i64: 1, 8, 128>}, {pipeline_mode = #tpu.pipeline_mode<synchronous>, transform_indices = @transform_1, window_bounds = array<i64: 32, 8>}, {pipeline_mode = #tpu.pipeline_mode<synchronous>, transform_indices = @transform_2, window_bounds = array<i64: 40, 32>}, {pipeline_mode = #tpu.pipeline_mode<synchronous>, transform_indices = @transform_3, window_bounds = array<i64: 32, 32>}, {pipeline_mode = #tpu.pipeline_mode<synchronous>, transform_indices = @transform_4, window_bounds = array<i64: 32, 32>}, {pipeline_mode = #tpu.pipeline_mode<synchronous>, transform_indices = @transform_5, window_bounds = array<i64: 8, 32>}, {pipeline_mode = #tpu.pipeline_mode<synchronous>, transform_indices = @transform_6, window_bounds = array<i64: 32, 8>}, {pipeline_mode = #tpu.pipeline_mode<synchronous>, transform_indices = @transform_7, window_bounds = array<i64: 40, 10>}, {transform_indices = @transform_8, window_bounds = array<i64: 2>}, {transform_indices = @transform_9, window_bounds = array<i64: 1, 32, 128>}]} {
    %c0 = arith.constant 0 : index
    %c0_0 = arith.constant 0 : index
    %0 = vector.load %arg8[%c0, %c0_0] : memref<40x10xf32, #tpu.memory_space<vmem>>, vector<40x10xf32>
    %c0_1 = arith.constant 0 : index
    %c0_2 = arith.constant 0 : index
    %c0_3 = arith.constant 0 : index
    %1 = vector.load %arg1[%c0_1, %c0_2, %c0_3] : memref<1x8x128xf32, #tpu.memory_space<vmem>>, vector<1x8x128xf32>
    %2 = vector.shape_cast %1 : vector<1x8x128xf32> to vector<8x128xf32>
    %3 = arith.truncf %2 : vector<8x128xf32> to vector<8x128xbf16>
    %c0_4 = arith.constant 0 : index
    %c0_5 = arith.constant 0 : index
    %4 = vector.load %arg2[%c0_4, %c0_5] : memref<32x8xbf16, #tpu.memory_space<vmem>>, vector<32x8xbf16>
    %cst = arith.constant dense<0.000000e+00> : vector<32x128xf32>
    %5 = tpu.matmul %4, %3, %cst {dimension_numbers = #tpu.dot_dimension_numbers<[1], [0], [0], [1], [0, 0, 1, 1], [], []>} : vector<32x8xbf16>, vector<8x128xbf16>, vector<32x128xf32> -> vector<32x128xf32>
    %6 = vector.extract_strided_slice %0 {offsets = [0, 0], sizes = [32, 1], strides = [1, 1]} : vector<40x10xf32> to vector<32x1xf32>
    %7 = vector.broadcast %6 : vector<32x1xf32> to vector<32x128xf32>
    %8 = arith.addf %5, %7 : vector<32x128xf32>
    %cst_6 = arith.constant 0.000000e+00 : f32
    %9 = vector.broadcast %cst_6 : f32 to vector<32x128xf32>
    %10 = arith.cmpf ogt, %8, %9 : vector<32x128xf32>
    %cst_7 = arith.constant 0.000000e+00 : f32
    %11 = vector.broadcast %cst_7 : f32 to vector<32x128xf32>
    %12 = arith.minimumf %8, %11 : vector<32x128xf32>
    %13 = math.exp %12 : vector<32x128xf32>
    %cst_8 = arith.constant 1.000000e+00 : f32
    %14 = vector.broadcast %cst_8 : f32 to vector<32x128xf32>
    %15 = arith.subf %13, %14 : vector<32x128xf32>
    %16 = arith.select %10, %8, %15 : vector<32x128xi1>, vector<32x128xf32>
    %17 = vector.extract_strided_slice %0 {offsets = [0, 1], sizes = [32, 1], strides = [1, 1]} : vector<40x10xf32> to vector<32x1xf32>
    %18 = vector.extract_strided_slice %0 {offsets = [0, 2], sizes = [32, 1], strides = [1, 1]} : vector<40x10xf32> to vector<32x1xf32>
    %cst_9 = arith.constant dense<0.000000e+00> : vector<128xf32>
    %19 = vector.multi_reduction <add>, %16, %cst_9 [0] : vector<32x128xf32> to vector<128xf32>
    %20 = vector.shape_cast %19 : vector<128xf32> to vector<1x128xf32>
    %cst_10 = arith.constant 3.200000e+01 : f32
    %21 = vector.broadcast %cst_10 : f32 to vector<1x128xf32>
    %22 = arith.divf %20, %21 : vector<1x128xf32>
    %23 = vector.broadcast %22 : vector<1x128xf32> to vector<32x128xf32>
    %24 = arith.subf %16, %23 : vector<32x128xf32>
    %25 = arith.mulf %24, %24 : vector<32x128xf32>
    %cst_11 = arith.constant dense<0.000000e+00> : vector<128xf32>
    %26 = vector.multi_reduction <add>, %25, %cst_11 [0] : vector<32x128xf32> to vector<128xf32>
    %27 = vector.shape_cast %26 : vector<128xf32> to vector<1x128xf32>
    %cst_12 = arith.constant 3.200000e+01 : f32
    %28 = vector.broadcast %cst_12 : f32 to vector<1x128xf32>
    %29 = arith.divf %27, %28 : vector<1x128xf32>
    %30 = vector.broadcast %22 : vector<1x128xf32> to vector<32x128xf32>
    %31 = arith.subf %16, %30 : vector<32x128xf32>
    %cst_13 = arith.constant 9.99999974E-6 : f32
    %32 = vector.broadcast %cst_13 : f32 to vector<1x128xf32>
    %33 = arith.addf %29, %32 : vector<1x128xf32>
    %34 = math.rsqrt %33 : vector<1x128xf32>
    %35 = vector.broadcast %34 : vector<1x128xf32> to vector<32x128xf32>
    %36 = arith.mulf %31, %35 : vector<32x128xf32>
    %37 = vector.broadcast %17 : vector<32x1xf32> to vector<32x128xf32>
    %38 = arith.mulf %36, %37 : vector<32x128xf32>
    %39 = vector.broadcast %18 : vector<32x1xf32> to vector<32x128xf32>
    %40 = arith.addf %38, %39 : vector<32x128xf32>
    %c0_14 = arith.constant 0 : index
    %c0_15 = arith.constant 0 : index
    %41 = vector.load %arg3[%c0_14, %c0_15] : memref<40x32xbf16, #tpu.memory_space<vmem>>, vector<40x32xbf16>
    %42 = arith.truncf %40 : vector<32x128xf32> to vector<32x128xbf16>
    %cst_16 = arith.constant dense<0.000000e+00> : vector<40x128xf32>
    %43 = tpu.matmul %41, %42, %cst_16 {dimension_numbers = #tpu.dot_dimension_numbers<[1], [0], [0], [1], [0, 0, 1, 1], [], []>} : vector<40x32xbf16>, vector<32x128xbf16>, vector<40x128xf32> -> vector<40x128xf32>
    %44 = vector.extract_strided_slice %0 {offsets = [0, 3], sizes = [40, 1], strides = [1, 1]} : vector<40x10xf32> to vector<40x1xf32>
    %45 = vector.broadcast %44 : vector<40x1xf32> to vector<40x128xf32>
    %46 = arith.addf %43, %45 : vector<40x128xf32>
    %47 = vector.extract_strided_slice %46 {offsets = [0, 0], sizes = [32, 128], strides = [1, 1]} : vector<40x128xf32> to vector<32x128xf32>
    %48 = vector.extract_strided_slice %46 {offsets = [32, 0], sizes = [1, 128], strides = [1, 1]} : vector<40x128xf32> to vector<1x128xf32>
    %cst_17 = arith.constant dense<0xFF800000> : vector<1xf32>
    %49 = vector.multi_reduction <maximumf>, %48, %cst_17 [1] : vector<1x128xf32> to vector<1xf32>
    %50 = vector.shape_cast %49 : vector<1xf32> to vector<1x1xf32>
    %51 = vector.broadcast %50 : vector<1x1xf32> to vector<1x128xf32>
    %52 = arith.subf %48, %51 : vector<1x128xf32>
    %53 = math.exp %52 : vector<1x128xf32>
    %cst_18 = arith.constant dense<0.000000e+00> : vector<1xf32>
    %54 = vector.multi_reduction <add>, %53, %cst_18 [1] : vector<1x128xf32> to vector<1xf32>
    %55 = vector.shape_cast %54 : vector<1xf32> to vector<1x1xf32>
    %56 = vector.broadcast %53 : vector<1x128xf32> to vector<32x128xf32>
    %57 = arith.mulf %47, %56 : vector<32x128xf32>
    %cst_19 = arith.constant dense<0.000000e+00> : vector<32xf32>
    %58 = vector.multi_reduction <add>, %57, %cst_19 [1] : vector<32x128xf32> to vector<32xf32>
    %59 = vector.shape_cast %58 : vector<32xf32> to vector<32x1xf32>
    %60 = tpu.reciprocal %55 {approx = true} : vector<1x1xf32> -> vector<1x1xf32>
    %61 = vector.broadcast %60 : vector<1x1xf32> to vector<32x1xf32>
    %62 = arith.mulf %59, %61 : vector<32x1xf32>
    %c0_20 = arith.constant 0 : index
    %c0_21 = arith.constant 0 : index
    %63 = vector.load %arg4[%c0_20, %c0_21] : memref<32x32xbf16, #tpu.memory_space<vmem>>, vector<32x32xbf16>
    %c0_22 = arith.constant 0 : index
    %c0_23 = arith.constant 0 : index
    %64 = vector.load %arg5[%c0_22, %c0_23] : memref<32x32xbf16, #tpu.memory_space<vmem>>, vector<32x32xbf16>
    %c0_24 = arith.constant 0 : index
    %c0_25 = arith.constant 0 : index
    %65 = vector.load %arg6[%c0_24, %c0_25] : memref<8x32xbf16, #tpu.memory_space<vmem>>, vector<8x32xbf16>
    %c0_26 = arith.constant 0 : index
    %c0_27 = arith.constant 0 : index
    %66 = vector.load %arg7[%c0_26, %c0_27] : memref<32x8xbf16, #tpu.memory_space<vmem>>, vector<32x8xbf16>
    %c0_28 = arith.constant 0 : index
    %67 = memref.load %arg9[%c0_28] : memref<2xf32, #tpu.memory_space<smem>>
    %c1 = arith.constant 1 : index
    %68 = memref.load %arg9[%c1] : memref<2xf32, #tpu.memory_space<smem>>
    %69 = arith.truncf %40 : vector<32x128xf32> to vector<32x128xbf16>
    %cst_29 = arith.constant dense<0.000000e+00> : vector<32x128xf32>
    %70 = tpu.matmul %63, %69, %cst_29 {dimension_numbers = #tpu.dot_dimension_numbers<[1], [0], [0], [1], [0, 0, 1, 1], [], []>} : vector<32x32xbf16>, vector<32x128xbf16>, vector<32x128xf32> -> vector<32x128xf32>
    %71 = vector.extract_strided_slice %0 {offsets = [0, 4], sizes = [32, 1], strides = [1, 1]} : vector<40x10xf32> to vector<32x1xf32>
    %72 = vector.broadcast %71 : vector<32x1xf32> to vector<32x128xf32>
    %73 = arith.addf %70, %72 : vector<32x128xf32>
    %cst_30 = arith.constant 0.000000e+00 : f32
    %74 = vector.broadcast %cst_30 : f32 to vector<32x128xf32>
    %75 = arith.maximumf %73, %74 : vector<32x128xf32>
    %76 = vector.broadcast %62 : vector<32x1xf32> to vector<32x128xf32>
    %77 = arith.mulf %75, %76 : vector<32x128xf32>
    %78 = arith.truncf %77 : vector<32x128xf32> to vector<32x128xbf16>
    %cst_31 = arith.constant dense<0.000000e+00> : vector<32x128xf32>
    %79 = tpu.matmul %64, %78, %cst_31 {dimension_numbers = #tpu.dot_dimension_numbers<[1], [0], [0], [1], [0, 0, 1, 1], [], []>} : vector<32x32xbf16>, vector<32x128xbf16>, vector<32x128xf32> -> vector<32x128xf32>
    %80 = vector.extract_strided_slice %0 {offsets = [0, 5], sizes = [32, 1], strides = [1, 1]} : vector<40x10xf32> to vector<32x1xf32>
    %81 = vector.broadcast %80 : vector<32x1xf32> to vector<32x128xf32>
    %82 = arith.addf %79, %81 : vector<32x128xf32>
    %83 = vector.broadcast %67 : f32 to vector<32x128xf32>
    %84 = arith.mulf %83, %16 : vector<32x128xf32>
    %85 = arith.addf %82, %84 : vector<32x128xf32>
    %86 = vector.extract_strided_slice %0 {offsets = [0, 6], sizes = [32, 1], strides = [1, 1]} : vector<40x10xf32> to vector<32x1xf32>
    %87 = vector.extract_strided_slice %0 {offsets = [0, 7], sizes = [32, 1], strides = [1, 1]} : vector<40x10xf32> to vector<32x1xf32>
    %cst_32 = arith.constant dense<0.000000e+00> : vector<128xf32>
    %88 = vector.multi_reduction <add>, %85, %cst_32 [0] : vector<32x128xf32> to vector<128xf32>
    %89 = vector.shape_cast %88 : vector<128xf32> to vector<1x128xf32>
    %cst_33 = arith.constant 3.200000e+01 : f32
    %90 = vector.broadcast %cst_33 : f32 to vector<1x128xf32>
    %91 = arith.divf %89, %90 : vector<1x128xf32>
    %92 = vector.broadcast %91 : vector<1x128xf32> to vector<32x128xf32>
    %93 = arith.subf %85, %92 : vector<32x128xf32>
    %94 = arith.mulf %93, %93 : vector<32x128xf32>
    %cst_34 = arith.constant dense<0.000000e+00> : vector<128xf32>
    %95 = vector.multi_reduction <add>, %94, %cst_34 [0] : vector<32x128xf32> to vector<128xf32>
    %96 = vector.shape_cast %95 : vector<128xf32> to vector<1x128xf32>
    %cst_35 = arith.constant 3.200000e+01 : f32
    %97 = vector.broadcast %cst_35 : f32 to vector<1x128xf32>
    %98 = arith.divf %96, %97 : vector<1x128xf32>
    %99 = vector.broadcast %91 : vector<1x128xf32> to vector<32x128xf32>
    %100 = arith.subf %85, %99 : vector<32x128xf32>
    %cst_36 = arith.constant 9.99999974E-6 : f32
    %101 = vector.broadcast %cst_36 : f32 to vector<1x128xf32>
    %102 = arith.addf %98, %101 : vector<1x128xf32>
    %103 = math.rsqrt %102 : vector<1x128xf32>
    %104 = vector.broadcast %103 : vector<1x128xf32> to vector<32x128xf32>
    %105 = arith.mulf %100, %104 : vector<32x128xf32>
    %106 = vector.broadcast %86 : vector<32x1xf32> to vector<32x128xf32>
    %107 = arith.mulf %105, %106 : vector<32x128xf32>
    %108 = vector.broadcast %87 : vector<32x1xf32> to vector<32x128xf32>
    %109 = arith.addf %107, %108 : vector<32x128xf32>
    %110 = arith.truncf %109 : vector<32x128xf32> to vector<32x128xbf16>
    %cst_37 = arith.constant dense<0.000000e+00> : vector<8x128xf32>
    %111 = tpu.matmul %65, %110, %cst_37 {dimension_numbers = #tpu.dot_dimension_numbers<[1], [0], [0], [1], [0, 0, 1, 1], [], []>} : vector<8x32xbf16>, vector<32x128xbf16>, vector<8x128xf32> -> vector<8x128xf32>
    %112 = vector.extract_strided_slice %0 {offsets = [0, 8], sizes = [8, 1], strides = [1, 1]} : vector<40x10xf32> to vector<8x1xf32>
    %113 = vector.broadcast %112 : vector<8x1xf32> to vector<8x128xf32>
    %114 = arith.addf %111, %113 : vector<8x128xf32>
    %cst_38 = arith.constant 0.000000e+00 : f32
    %115 = vector.broadcast %cst_38 : f32 to vector<8x128xf32>
    %116 = arith.cmpf ogt, %114, %115 : vector<8x128xf32>
    %cst_39 = arith.constant 0.000000e+00 : f32
    %117 = vector.broadcast %cst_39 : f32 to vector<8x128xf32>
    %118 = arith.minimumf %114, %117 : vector<8x128xf32>
    %119 = math.exp %118 : vector<8x128xf32>
    %cst_40 = arith.constant 1.000000e+00 : f32
    %120 = vector.broadcast %cst_40 : f32 to vector<8x128xf32>
    %121 = arith.subf %119, %120 : vector<8x128xf32>
    %122 = arith.select %116, %114, %121 : vector<8x128xi1>, vector<8x128xf32>
    %123 = arith.truncf %122 : vector<8x128xf32> to vector<8x128xbf16>
    %cst_41 = arith.constant dense<0.000000e+00> : vector<32x128xf32>
    %124 = tpu.matmul %66, %123, %cst_41 {dimension_numbers = #tpu.dot_dimension_numbers<[1], [0], [0], [1], [0, 0, 1, 1], [], []>} : vector<32x8xbf16>, vector<8x128xbf16>, vector<32x128xf32> -> vector<32x128xf32>
    %125 = vector.extract_strided_slice %0 {offsets = [0, 9], sizes = [32, 1], strides = [1, 1]} : vector<40x10xf32> to vector<32x1xf32>
    %126 = vector.broadcast %125 : vector<32x1xf32> to vector<32x128xf32>
    %127 = arith.addf %124, %126 : vector<32x128xf32>
    %128 = vector.broadcast %68 : f32 to vector<32x128xf32>
    %129 = arith.mulf %128, %85 : vector<32x128xf32>
    %130 = arith.addf %127, %129 : vector<32x128xf32>
    %c0_42 = arith.constant 0 : index
    %c0_43 = arith.constant 0 : index
    %c0_44 = arith.constant 0 : index
    %131 = vector.load %arg10[%c0_42, %c0_43, %c0_44] : memref<1x32x128xf32, #tpu.memory_space<vmem>>, vector<1x32x128xf32>
    %132 = vector.shape_cast %131 : vector<1x32x128xf32> to vector<32x128xf32>
    %133 = vector.shape_cast %130 : vector<32x128xf32> to vector<1x32x128xf32>
    tpu.vector_store %arg10[%c0_42, %c0_43, %c0_44], %133 {strides = array<i32>} : memref<1x32x128xf32, #tpu.memory_space<vmem>>, vector<1x32x128xf32>,
    return
  }
  func.func @transform_0(%arg0: i32) -> (i32, i32, i32) {
    %c0_i32 = arith.constant 0 : i32
    %c0_i32_0 = arith.constant 0 : i32
    %c0_i32_1 = arith.constant 0 : i32
    return %arg0, %c0_i32, %c0_i32_0 : i32, i32, i32
  }
  func.func @transform_1(%arg0: i32) -> (i32, i32) {
    %c0_i32 = arith.constant 0 : i32
    %c0_i32_0 = arith.constant 0 : i32
    %c0_i32_1 = arith.constant 0 : i32
    return %c0_i32, %c0_i32_0 : i32, i32
  }
  func.func @transform_2(%arg0: i32) -> (i32, i32) {
    %c0_i32 = arith.constant 0 : i32
    %c0_i32_0 = arith.constant 0 : i32
    %c0_i32_1 = arith.constant 0 : i32
    return %c0_i32, %c0_i32_0 : i32, i32
  }
  func.func @transform_3(%arg0: i32) -> (i32, i32) {
    %c0_i32 = arith.constant 0 : i32
    %c0_i32_0 = arith.constant 0 : i32
    %c0_i32_1 = arith.constant 0 : i32
    return %c0_i32, %c0_i32_0 : i32, i32
  }
  func.func @transform_4(%arg0: i32) -> (i32, i32) {
    %c0_i32 = arith.constant 0 : i32
    %c0_i32_0 = arith.constant 0 : i32
    %c0_i32_1 = arith.constant 0 : i32
    return %c0_i32, %c0_i32_0 : i32, i32
  }
  func.func @transform_5(%arg0: i32) -> (i32, i32) {
    %c0_i32 = arith.constant 0 : i32
    %c0_i32_0 = arith.constant 0 : i32
    %c0_i32_1 = arith.constant 0 : i32
    return %c0_i32, %c0_i32_0 : i32, i32
  }
  func.func @transform_6(%arg0: i32) -> (i32, i32) {
    %c0_i32 = arith.constant 0 : i32
    %c0_i32_0 = arith.constant 0 : i32
    %c0_i32_1 = arith.constant 0 : i32
    return %c0_i32, %c0_i32_0 : i32, i32
  }
  func.func @transform_7(%arg0: i32) -> (i32, i32) {
    %c0_i32 = arith.constant 0 : i32
    %c0_i32_0 = arith.constant 0 : i32
    %c0_i32_1 = arith.constant 0 : i32
    return %c0_i32, %c0_i32_0 : i32, i32
  }
  func.func @transform_8(%arg0: i32) -> i32 {
    %c0_i32 = arith.constant 0 : i32
    %c0_i32_0 = arith.constant 0 : i32
    return %c0_i32 : i32
  }
  func.func @transform_9(%arg0: i32) -> (i32, i32, i32) {
    %c0_i32 = arith.constant 0 : i32
    %c0_i32_0 = arith.constant 0 : i32
    %c0_i32_1 = arith.constant 0 : i32
    return %arg0, %c0_i32, %c0_i32_0 : i32, i32, i32
  }
}

</mosaic_0001>

<bundles_post_ra>
// kernel: tpu_custom_call.1
= control target key start
LH: loop header
LB: loop body
LE: loop exit
PB: predicated region body
PF: predicated region fallthrough
CT: control target
= control target key end

     0   :  { %14 = vsyncpa [#allocation4], 0  ;;  %s1875_s0 = inlined_call_operand.vmem [shape: f32[2,8,128], index: 0, kind: input, shape index: {}]   ;;  %s1876_s1 = inlined_call_operand.vmem [shape: bf16[32,8], index: 1, kind: input, shape index: {}]   ;;  %s1877_s2 = inlined_call_operand.vmem [shape: bf16[40,32], index: 2, kind: input, shape index: {}]   ;;  %s1878_s3 = inlined_call_operand.vmem [shape: bf16[32,32], index: 3, kind: input, shape index: {}]   ;;  %s1879_s4 = inlined_call_operand.vmem [shape: bf16[32,32], index: 4, kind: input, shape index: {}]   ;;  %s1880_s5 = inlined_call_operand.vmem [shape: bf16[8,32], index: 5, kind: input, shape index: {}]   ;;  %s1881_s6 = inlined_call_operand.vmem [shape: bf16[32,8], index: 6, kind: input, shape index: {}]   ;;  %s1882_s7 = inlined_call_operand.vmem [shape: f32[40,10], index: 7, kind: input, shape index: {}]   ;;  %s1883_s8 = inlined_call_operand.vmem [shape: f32[2], index: 8, kind: input, shape index: {}]   ;;  %s1884_s9 = inlined_call_operand.hbm [shape: f32[2,32,128], index: 9, kind: output, shape index: {}]  }
   0x1   :  { %15 = vsyncpa [#allocation3], 0 }
   0x2   :  { %17 = vsyncpa [#allocation3 + $0x1], 0  ;;  %s1578_s30 = smov 0   ;;  %s1580_s10 = smov 0  }
   0x3   :  { %s1582_s11 = smov 0   ;;  %s1584_s12 = smov 0  }
   0x4 LB: > { %s1599_s13 = sadd.s32 4294967295, %s1510_s12   ;;  %s1196_s14 = sadd.s32 4294967294, %s1510_s12   ;;  %s1510_s12 = sphi %s1584_s12, %s1891_s12   ;;  %s1506_s11 = sphi %s1582_s11, %s1890_s11   ;;  %s1502_s10 = sphi %s1580_s10, %s1889_s10   ;;  %s1498_s30 = sphi %s1578_s30, %s1888_s30  }
   0x5   : > { %s1603_s15 = sadd.s32 1, %s1510_s12   ;;  %s224_s16 = sadd.s32 1, %s1506_s11 }
   0x6   : > { %s221_s17 = ssub.s32 %s1510_s12, %s1603_s15  ;;  %p234_p0 = scmp.ne.s32.totalorder %s1506_s11, %s1502_s10 }
   0x7   : > { %p222_p1 = scmp.eq.s32.totalorder %s221_s17, 0  ;;  %p235_p2 = scmp.eq.s32.totalorder %s1599_s13, 1 }
   0x8   : > { %p240_p3 = scmp.ne.s32.totalorder %s1502_s10, %s1498_s30  ;;  %p241_p4 = scmp.eq.s32.totalorder %s1196_s14, 1 }
   0x9   : > { %s1614_s18 = scalar_select %p222_p1, %s1506_s11, %s224_s16  }
   0xa   : > { %p1616_p5 = por %p235_p2, %p234_p0  ;;  %p1620_p6 = por %p241_p4, %p240_p3 }
   0xb   : > { %p1197_p7 = scmp.ge.s32.totalorder %s1510_s12, 1  ;;  %p248_p8 = scmp.lt.s32.totalorder %s1510_s12, 3 }
   0xc   : > { %p1329_p9 = scmp.eq.s32.totalorder %s1599_s13, 0  ;;  %s282_s24 = sshll.u32 %s1883_s8, 4  ;;  %s283_s24 = int_to_ptr.vmem [resolvable:$true] %s282_s24 }
   0xd   : > { %p1627_p10 = pnand %p1197_p7, %p248_p8  ;;  %s1429_s25 = scalar_lea.vmem %s283_s24, 16 }
   0xe   : > { %p1430_p13 = scmp.ne.s32.totalorder %s283_s24, %s1429_s25  ;;  %p1437_p3 = scmp.lt.s32.totalorder %s283_s24, %s283_s24 }
   0xf   : > { %p1321_p11 = pneg %p1627_p10  ;;  %p1438_p4 = scmp.lt.s32.totalorder %s1429_s25, %s1429_s25 }
  0x11   : > { %p1322_p12 = pnand %p1329_p9, %p1321_p11  ;;  %p1439_p7 = por %p1438_p4, %p1437_p3 }
  0x13   : > { %p1431_p0 = pneg %p1322_p12 }
  0x15   : > { %p1432_p1 = pnand %p1431_p0, %p1430_p13 }
  0x17   : > { %p1433_p2 = pneg %p1432_p1 }
  0x19   : > { %p1440_p8 = pnand %p1439_p7, %p1433_p2 }
  0x1b   : > { %1443 = shalt.err (!%p1440_p8)
}
  0x1c   : > { %s1512_s26 = smov [#allocation2]   ;;  %302 = sbr.rel (%p1627_p10) target bundleno = 1683 (0x693), region = 56 }
  0x1d   : > { %1324 = dma.vmem_to_smem (!%p1322_p12), %s283_s24, 16, %s1512_s26, [#allocation4]  }
  0x23   : > { %1489 = dma.done.wait (%p1329_p9), [#allocation4], 16  }
  0x24   : > { %1491 = vsyncadd (%p1329_p9), [#allocation4], 4294967280 }
  0x25   : > { %308 = sfence }
  0x26   : > { %p338_p11 = scmp.lt.s32.totalorder %s1599_s13, 1  ;;  %v1400_v0 = vld [vmem:[%s1876_s1] sm:$0xff]   ;;  %vm384_vm0 = vcmask 64512   ;;  %v1657_v2 = vld [vmem:[%s1882_s7 + $0x10] sm:$0xff]  ;;  %v1513_v3 = vmov 0   ;;  %v1663_v4 = vld [vmem:[%s1882_s7 + $0x8] sm:$0xff] }
  0x27   : > { %v1652_v1 = vld [vmem:[%s1882_s7] sm:$0xff]  ;;  %1263 = vmatprep.mubr.msk.bf16.mxu0 %vm384_vm0, %v1400_v0  ;;  %1379 = vset.pattern.permute.xlu0 %v1513_v3  ;;  %v1669_v5 = vld [vmem:[%s1882_s7 + $0x18] sm:$0xff]  ;;  %vm391_vm1 = vcmask 1043456   ;;  %v1401_v9 = vld [vmem:[%s1876_s1 + $0x8] sm:$0xff]   ;;  %v1514_v10 = vmov 1   ;;  %v1515_v11 = vmov 2  }
  0x28   : > { %s339_s29 = scalar_select %p338_p11, %s1599_s13, 1  ;;  %356 = vperm.xlu0 %1379, %v1652_v1   ;;  %1380 = vset.pattern.permute.xlu1 %v1513_v3  ;;  %v1516_v12 = vmov 0.0   ;;  %vm1517_vm2 = vmmov 0   ;;  %v347_v13 = vld [vmem:[%s1882_s7 + $0x20] sm:$0xff]  ;;  %v1518_v14 = vmov 3   ;;  %vm584_vm7 = vcmask 261120  }
  0x29   : > { %366 = vperm.xlu1 %1380, %v1657_v2   ;;  %1267 = vmatprep.subr.bf16.mxu1 %v1516_v12  ;;  %vm650_vm8 = vcmask 1040384   ;;  %s1218_s16 = sld [smem:[#allocation2 + $0x1]]  ;;  %s335_s17 = sand.u32 1, %s1502_s10  }
  0x2a   : > { %s1203_s24 = sshll.u32 %s339_s29, 3  ;;  %1271 = vmatprep.mubr.msk.bf16.mxu1 %vm1517_vm2, %v1516_v12  ;;  %s1202_s21 = sshll.u32 %s335_s17, 5 }
  0x2b   : > { %s341_s14 = scalar_lea.vmem %s1875_s0, %s1203_s24  ;;  %s698_s24 = sld [smem:[#allocation2]] }
  0x2c   : > { %v348_v6 = vld [vmem:[%s341_s14] sm:$0xff]  ;;  %361 = vperm.xlu0 %1379, %v1663_v4   ;;  %s337_s22 = scalar_lea.vmem [#allocation5], %s1202_s21  ;;  %s1834_s27 = scalar_lea.sflag [#allocation3], %s335_s17 }
  0x2d   : > { %v349_v7 = vpack.c.bf16 %v348_v6, %v348_v6  ;;  %371 = vperm.xlu1 %1380, %v1669_v5   ;;  %s1122_s23 = sshll.u32 %s337_s22, 4  ;;  %s1525_s14 = smov [#allocation5]   ;;  %s1825_s23 = int_to_ptr.vmem [resolvable:$true] %s1122_s23 }
  0x2e   : > { %s1444_s28 = scalar_lea.vmem %s1825_s23, 512  ;;  %s1448_s29 = sshll.u32 %s1525_s14, 4  ;;  %s1449_s29 = int_to_ptr.vmem [resolvable:$false] %s1448_s29 }
  0x2f   : > { %1313 = vmatprep.subr.msk.bf16.mxu0 %vm391_vm1, %v349_v7  ;;  %v393_v8 = vsel %vm391_vm1, %v349_v7, 0  ;;  %p1445_p9 = scmp.ne.s32.totalorder %s1825_s23, %s1444_s28  ;;  %p1451_p13 = scmp.lt.s32.totalorder %s1825_s23, %s1449_s29 }
  0x30   : > { %1262 = vmatpush3.bf16.msra.mxu0 %v393_v8  ;;  %1381 = vset.pattern.permute.xlu0 %v1514_v10 }
  0x31   : > { %1382 = vset.pattern.permute.xlu1 %v1514_v10  ;;  %504 = vperm.xlu0 %1381, %v1652_v1   ;;  %p1446_p10 = pnand %p1445_p9, %p1616_p5 }
  0x32   : > { %508 = vperm.xlu1 %1382, %v1663_v4  }
  0x33   : > { %1264 = vmatmul.mubr.msk.bf16.vlgmr.msra.gmra.mrb[0].mxu0 %vm384_vm0, %v1401_v9  ;;  %p1447_p12 = pneg %p1446_p10 }
  0x35   : > { %1384 = vset.pattern.permute.xlu0 %v1515_v11 }
  0x36   : > { %1383 = vset.pattern.permute.xlu1 %v1515_v11  ;;  %528 = vperm.xlu0 %1384, %v1663_v4  }
  0x37   : > { %524 = vperm.xlu1 %1383, %v1652_v1  }
  0x3a   : > { %532 = vperm.xlu0 %1384, %v1657_v2  }
  0x3b   : > { %1385 = vset.pattern.permute.xlu1 %v1514_v10 }
  0x3c   : > { %512 = vperm.xlu1 %1385, %v1657_v2  }
  0x3e   : > { %1387 = vset.pattern.permute.xlu0 %v1518_v14 }
  0x3f   : > { %568 = vperm.xlu0 %1387, %v347_v13  }
  0x40   : > { %516 = vperm.xlu1 %1385, %v1669_v5  }
  0x43   : > { %551 = vperm.xlu0 %1387, %v1652_v1  }
  0x44   : > { %1386 = vset.pattern.permute.xlu1 %v1515_v11 }
  0x45   : > { %536 = vperm.xlu1 %1386, %v1669_v5  }
  0x47   : > { %555 = vperm.xlu0 %1387, %v1663_v4  }
  0x4b   : > { %559 = vperm.xlu0 %1387, %v1657_v2  }
  0x4f   : > { %563 = vperm.xlu0 %1387, %v1669_v5  }
  0xa7   : > { %v357_v16 = vpop.permute.xlu0 %356 }
  0xa8   : > { %v367_v15 = vpop.permute.xlu1 %366 }
  0xab   : > { %v362_v23 = vpop.permute.xlu0 %361 }
  0xac   : > { %v372_v18 = vpop.permute.xlu1 %371 }
  0xb1   : > { %v509_v10 = vpop.permute.xlu1 %508 }
 0x106   : > { %v1265_v17 = vpop.f32.mrb[0].mxu0 }
 0x107   : > { %v438_v19 = vadd.f32 %v1265_v17, %v367_v15  ;;  %v429_v20 = vpop.f32.mrb[1].mxu0 }
 0x108   : > { %v430_v21 = vadd.f32 %v429_v20, %v357_v16  ;;  %v1266_v22 = vpop.f32.mrb[2].mxu0  ;;  %v525_v16 = vpop.permute.xlu1 %524 }
 0x109   : > { %v450_v24 = vmin.f32 %v438_v19, 0.0  ;;  %v441_v25 = vadd.f32 %v1266_v22, %v372_v18  ;;  %v432_v26 = vpop.f32.mrb[3].mxu0  ;;  %vm446_vm5 = vcmp.gt.f32.partialorder %v438_v19, 0.0  ;;  %v505_v20 = vpop.permute.xlu0 %504 }
 0x10a   : > { %v448_v27 = vmin.f32 %v430_v21, 0.0  ;;  %v433_v28 = vadd.f32 %v432_v26, %v362_v23  ;;  %vm444_vm3 = vcmp.gt.f32.partialorder %v430_v21, 0.0 }
 0x10b   : > { %v456_v29 = vmul.f32 1.442695, %v450_v24  ;;  %v451_v30 = vmin.f32 %v441_v25, 0.0  ;;  %vm447_vm6 = vcmp.gt.f32.partialorder %v441_v25, 0.0 }
 0x10c   : > { %v452_v31 = vmul.f32 1.442695, %v448_v27  ;;  %v449_v32 = vmin.f32 %v433_v28, 0.0  ;;  %vm445_vm4 = vcmp.gt.f32.partialorder %v433_v28, 0.0 }
 0x10d   : > { %1411 = vpow2.f32 %v456_v29  ;;  %v458_v33 = vmul.f32 1.442695, %v451_v30  ;;  %v529_v22 = vpop.permute.xlu0 %528 }
 0x10e   : > { %1413 = vpow2.f32 %v452_v31  ;;  %v454_v34 = vmul.f32 1.442695, %v449_v32 }
 0x10f   : > { %1415 = vpow2.f32 %v458_v33 }
 0x110   : > { %1417 = vpow2.f32 %v454_v34 }
 0x111   : > { %v533_v29 = vpop.permute.xlu0 %532 }
 0x117   : > { %v1412_v35 = vpop.eup %1411 }
 0x118   : > { %v1414_v36 = vpop.eup %1413  ;;  %v1210_v40 = vadd.f32 -1.0, %v1412_v35 }
 0x119   : > { %v1416_v37 = vpop.eup %1415  ;;  %v1208_v38 = vadd.f32 -1.0, %v1414_v36 }
 0x11a   : > { %v1418_v39 = vpop.eup %1417  ;;  %v1211_v43 = vadd.f32 -1.0, %v1416_v37  ;;  %v1707_v46 = vsel %vm446_vm5, %v438_v19, %v1210_v40  ;;  %v513_v19 = vpop.permute.xlu1 %512  ;;  %v1402_v40 = vld [vmem:[%s1877_s2] sm:$0xff]  }
 0x11b   : > { %v1209_v41 = vadd.f32 -1.0, %v1418_v39  ;;  %v1701_v42 = vsel %vm444_vm3, %v430_v21, %v1208_v38 }
 0x11c   : > { %v1710_v48 = vsel %vm447_vm6, %v441_v25, %v1211_v43  ;;  %v1404_v43 = vld [vmem:[%s1877_s2 + $0x10] ss:$0 sps:$4 sm:$0xff]  }
 0x11d   : > { %v1703_v44 = vsel %vm445_vm4, %v433_v28, %v1209_v41  ;;  %v1403_v41 = vld [vmem:[%s1877_s2 + $0x8] sm:$0xff]  }
 0x11e   : > { %v468_v45 = vadd.f32 %v1703_v44, %v1701_v42  ;;  %v517_v21 = vpop.permute.xlu1 %516 }
 0x120   : > { %v469_v47 = vadd.f32 %v468_v45, %v1707_v46  ;;  %v1405_v45 = vld [vmem:[%s1878_s3] sm:$0xff]  }
 0x121   : > { %1287 = vmatprep.mubr.msk.bf16.mxu0 %vm584_vm7, %v1405_v45 }
 0x122   : > { %v470_v49 = vadd.f32 %v469_v47, %v1710_v48  ;;  %v537_v28 = vpop.permute.xlu1 %536  ;;  %v1406_v47 = vld [vmem:[%s1878_s3 + $0x8] sm:$0xff]  }
 0x124   : > { %v471_v50 = vrot.slane %v470_v49, 4 }
 0x126   : > { %v472_v51 = vadd.f32 %v471_v50, %v470_v49  ;;  %v1519_v49 = vmov 4  }
 0x127   : > { %1388 = vset.pattern.permute.xlu1 %v1519_v49  ;;  %1389 = vset.pattern.permute.xlu0 %v1519_v49 }
 0x128   : > { %v473_v52 = vrot.slane %v472_v51, 2 }
 0x12a   : > { %v474_v53 = vadd.f32 %v473_v52, %v472_v51 }
 0x12c   : > { %v475_v54 = vrot.slane %v474_v53, 1 }
 0x12e   : > { %v476_v55 = vadd.f32 %v475_v54, %v474_v53 }
 0x130   : > { %v478_v56 = vmul.f32 0.03125, %v476_v55 }
 0x132   : > { %v481_v57 = vsub.f32 %v1707_v46, %v478_v56  ;;  %v482_v58 = vsub.f32 %v1710_v48, %v478_v56  ;;  %v479_v59 = vsub.f32 %v1701_v42, %v478_v56  ;;  %v480_v60 = vsub.f32 %v1703_v44, %v478_v56 }
 0x134   : > { %v483_v61 = vmul.f32 %v479_v59, %v479_v59  ;;  %v484_v62 = vmul.f32 %v480_v60, %v480_v60  ;;  %v485_v63 = vmul.f32 %v481_v57, %v481_v57  ;;  %v486_v3 = vmul.f32 %v482_v58, %v482_v58 }
 0x136   : > { %v487_v0 = vadd.f32 %v484_v62, %v483_v61 }
 0x138   : > { %v488_v6 = vadd.f32 %v487_v0, %v485_v63 }
 0x13a   : > { %v489_v7 = vadd.f32 %v488_v6, %v486_v3 }
 0x13c   : > { %v490_v8 = vrot.slane %v489_v7, 4 }
 0x13e   : > { %v491_v9 = vadd.f32 %v490_v8, %v489_v7 }
 0x140   : > { %v492_v11 = vrot.slane %v491_v9, 2 }
 0x142   : > { %v493_v13 = vadd.f32 %v492_v11, %v491_v9 }
 0x144   : > { %v494_v14 = vrot.slane %v493_v13, 1 }
 0x146   : > { %v495_v15 = vadd.f32 %v494_v14, %v493_v13 }
 0x148   : > { %v496_v17 = vmul.f32 0.03125, %v495_v15 }
 0x14a   : > { %v497_v18 = vadd.f32 1e-05, %v496_v17 }
 0x14c   : > { %1419 = vrsqrt.f32 %v497_v18 }
 0x156   : > { %v1420_v23 = vpop.eup %1419 }
 0x157   : > { %v500_v24 = vmul.f32 %v1420_v23, %v480_v60  ;;  %v501_v25 = vmul.f32 %v1420_v23, %v481_v57  ;;  %v499_v26 = vmul.f32 %v1420_v23, %v479_v59  ;;  %v502_v27 = vmul.f32 %v1420_v23, %v482_v58  ;;  %v569_v58 = vpop.permute.xlu0 %568 }
 0x159   : > { %v520_v30 = vmul.f32 %v509_v10, %v500_v24  ;;  %v521_v31 = vmul.f32 %v513_v19, %v501_v25  ;;  %v519_v32 = vmul.f32 %v505_v20, %v499_v26  ;;  %v522_v33 = vmul.f32 %v517_v21, %v502_v27 }
 0x15a   : > { %v660_v10 = vlaneseq }
 0x15b   : > { %v539_v34 = vadd.f32 %v525_v16, %v519_v32  ;;  %v540_v35 = vadd.f32 %v529_v22, %v520_v30  ;;  %v542_v36 = vadd.f32 %v537_v28, %v522_v33  ;;  %v541_v37 = vadd.f32 %v533_v29, %v521_v31  ;;  %v552_v11 = vpop.permute.xlu0 %551  ;;  %v1407_v31 = vld [vmem:[%s1879_s4] sm:$0xff]  }
 0x15c   : > { %v661_v13 = vshrl.u32 %v660_v10, 7  ;;  %v1520_v32 = vmov 5   ;;  %v1521_v33 = vmov 7  }
 0x15d   : > { %v548_v38 = vpack.c.bf16 %v540_v35, %v539_v34  ;;  %v549_v39 = vpack.c.bf16 %v542_v36, %v541_v37  ;;  %v1522_v34 = vmov 6  }
 0x15e   : > { %v662_v14 = vsub.s32 0, %v661_v13 }
 0x15f   : > { %1268 = vmatpush3.bf16.msra.mxu1 %v548_v38  ;;  %1283 = vmatprep.subr.bf16.mxu0 %v548_v38  ;;  %v556_v15 = vpop.permute.xlu0 %555 }
 0x160   : > { %1284 = vmatpush3.bf16.msra.mxu0 %v548_v38  ;;  %1269 = vmatprep.subr.bf16.mxu1 %v1516_v12 }
 0x161   : > { %1285 = vmatprep.subr.bf16.mxu0 %v549_v39 }
 0x163   : > { %1270 = vmatpush3.bf16.msra.mxu1 %v549_v39  ;;  %v560_v21 = vpop.permute.xlu0 %559 }
 0x164   : > { %1286 = vmatpush3.bf16.msra.mxu0 %v549_v39 }
 0x166   : > { %1272 = vmatmul.mubr.msk.bf16.vlgmr.msra.gmra.mrb[0].mxu1 %vm584_vm7, %v1402_v40 }
 0x167   : > { %1275 = vmatprep.mubr.msk.bf16.mxu1 %vm1517_vm2, %v1516_v12  ;;  %1288 = vmatmul.mubr.msk.bf16.vlgmr.msra.gmra.mrb[4].mxu0 %vm584_vm7, %v1406_v47  ;;  %v564_v25 = vpop.permute.xlu0 %563 }
 0x168   : > { %1295 = vmatprep.mubr.msk.bf16.mxu0 %vm584_vm7, %v1407_v31 }
 0x16e   : > { %1276 = vmatmul.mubr.msk.bf16.gmra.mrb[4].mxu1 %vm584_vm7, %v1403_v41 }
 0x16f   : > { %1279 = vmatprep.mubr.msk.bf16.mxu1 %vm1517_vm2, %v1516_v12 }
 0x176   : > { %1280 = vmatmul.mubr.msk.bf16.gmra.mrb[8].mxu1 %vm584_vm7, %v1404_v43 }
 0x239   : > { %v628_v50 = vpop.f32.mrb[0].mxu1 }
 0x23a   : > { %v1273_v51 = vpop.f32.mrb[1].mxu1  ;;  %v1745_v3 = vpop.f32.mrb[4].mxu0  ;;  %v629_v17 = vadd.f32 %v628_v50, %v552_v11 }
 0x23b   : > { %v631_v52 = vpop.f32.mrb[2].mxu1  ;;  %v1747_v6 = vpop.f32.mrb[5].mxu0 }
 0x23c   : > { %v1274_v53 = vpop.f32.mrb[3].mxu1  ;;  %v632_v22 = vadd.f32 %v631_v52, %v556_v15  ;;  %v1290_v29 = vpop.f32.mrb[6].mxu0 }
 0x23d   : > { %v769_v30 = vpop.f32.mrb[7].mxu0 }
 0x241   : > { %v636_v54 = vpop.f32.mrb[4].mxu1 }
 0x242   : > { %v1277_v55 = vpop.f32.mrb[5].mxu1  ;;  %v637_v24 = vadd.f32 %v636_v54, %v560_v21 }
 0x243   : > { %v639_v56 = vpop.f32.mrb[6].mxu1 }
 0x244   : > { %v1278_v57 = vpop.f32.mrb[7].mxu1  ;;  %v640_v27 = vadd.f32 %v639_v56, %v564_v25 }
 0x249   : > { %v644_v59 = vpop.f32.mrb[8].mxu1 }
 0x24a   : > { %v645_v60 = vadd.f32 %v644_v59, %v569_v58  ;;  %v1281_v61 = vpop.f32.mrb[9].mxu1 }
 0x24b   : > { %v647_v62 = vpop.f32.mrb[10].mxu1 }
 0x24c   : > { %v1282_v63 = vpop.f32.mrb[11].mxu1  ;;  %v651_v0 = vsel %vm650_vm8, %v645_v60, -inf }
 0x24d   : > { %652 = vmax.xlane.f32.xlu1 %v651_v0 }
 0x25e   : > { %701 = vperm.xlu1 %1388, %v1652_v1  }
 0x262   : > { %709 = vperm.xlu1 %1388, %v1657_v2  }
 0x2da   : > { %v653_v7 = vpop.xlane.xlu1 %652 }
 0x2db   : > { %v654_v8 = vsub.f32 %v645_v60, %v653_v7 }
 0x2dd   : > { %v655_v9 = vmul.f32 1.442695, %v654_v8 }
 0x2de   : > { %v702_v35 = vpop.permute.xlu1 %701 }
 0x2df   : > { %1421 = vpow2.f32 %v655_v9  ;;  %v767_v43 = vadd.f32 %v1747_v6, %v702_v35  ;;  %v1408_v9 = vld [vmem:[%s1879_s4 + $0x8] sm:$0xff]  }
 0x2e1   : > { %v781_v51 = vmax.f32 %v767_v43, 0.0 }
 0x2e2   : > { %v710_v36 = vpop.permute.xlu1 %709 }
 0x2e3   : > { %v775_v57 = vadd.f32 %v1745_v3, %v710_v36  ;;  %v1523_v3 = vmov 8  }
 0x2e5   : > { %v783_v62 = vmax.f32 %v775_v57, 0.0 }
 0x2e9   : > { %v1422_v16 = vpop.eup %1421 }
 0x2ea   : > { %v657_v18 = vsel %vm650_vm8, %v1422_v16, 0.0  ;;  %v663_v19 = vrot.slane %v1422_v16, %v662_v14 }
 0x2eb   : > { %658 = vadd.xlane.f32.xlu0 %v657_v18 }
 0x2ec   : > { %v664_v20 = vmul.f32 %v663_v19, %v629_v17  ;;  %v665_v23 = vmul.f32 %v663_v19, %v632_v22  ;;  %v666_v26 = vmul.f32 %v663_v19, %v637_v24  ;;  %v667_v28 = vmul.f32 %v663_v19, %v640_v27 }
 0x2ee   : > { %668 = vadd.xlane.f32.xlu1 %v664_v20 }
 0x2f2   : > { %670 = vadd.xlane.f32.xlu1 %v665_v23 }
 0x2f6   : > { %672 = vadd.xlane.f32.xlu1 %v666_v26 }
 0x2fa   : > { %674 = vadd.xlane.f32.xlu1 %v667_v28 }
 0x301   : > { %705 = vperm.xlu0 %1389, %v1663_v4  }
 0x305   : > { %1392 = vset.pattern.permute.xlu0 %v1521_v33 }
 0x306   : > { %936 = vperm.xlu0 %1392, %v1652_v1  }
 0x30a   : > { %1395 = vset.pattern.permute.xlu0 %v1522_v34 }
 0x30b   : > { %713 = vperm.xlu1 %1388, %v1669_v5   ;;  %928 = vperm.xlu0 %1395, %v1669_v5  }
 0x30f   : > { %1390 = vset.pattern.permute.xlu1 %v1520_v32  ;;  %1397 = vset.pattern.permute.xlu0 %v1523_v3 }
 0x310   : > { %792 = vperm.xlu1 %1390, %v1652_v1   ;;  %958 = vperm.xlu0 %1397, %v1652_v1  }
 0x314   : > { %796 = vperm.xlu1 %1390, %v1663_v4  }
 0x318   : > { %800 = vperm.xlu1 %1390, %v1657_v2  }
 0x31c   : > { %804 = vperm.xlu1 %1390, %v1669_v5  }
 0x320   : > { %1391 = vset.pattern.permute.xlu1 %v1522_v34 }
 0x321   : > { %916 = vperm.xlu1 %1391, %v1652_v1  }
 0x325   : > { %920 = vperm.xlu1 %1391, %v1663_v4  }
 0x329   : > { %1393 = vset.pattern.permute.xlu1 %v1521_v33 }
 0x32a   : > { %940 = vperm.xlu1 %1393, %v1663_v4  }
 0x32e   : > { %1394 = vset.pattern.permute.xlu1 %v1522_v34 }
 0x32f   : > { %924 = vperm.xlu1 %1394, %v1657_v2  }
 0x333   : > { %1396 = vset.pattern.permute.xlu1 %v1521_v33 }
 0x334   : > { %944 = vperm.xlu1 %1396, %v1657_v2  }
 0x338   : > { %948 = vperm.xlu1 %1396, %v1669_v5  }
 0x378   : > { %v659_v37 = vpop.xlane.xlu0 %658 }
 0x379   : > { %1423 = vrcp.f32 %v659_v37 }
 0x37b   : > { %v669_v38 = vpop.xlane.xlu1 %668 }
 0x37f   : > { %v671_v39 = vpop.xlane.xlu1 %670 }
 0x380   : > { %v706_v40 = vpop.permute.xlu0 %705 }
 0x381   : > { %v770_v41 = vadd.f32 %v769_v30, %v706_v40 }
 0x383   : > { %v1424_v45 = vpop.eup %1423  ;;  %v673_v47 = vpop.xlane.xlu1 %672  ;;  %v782_v50 = vmax.f32 %v770_v41, 0.0 }
 0x384   : > { %v680_v49 = vrot.slane %v1424_v45, %v662_v14  ;;  %v872_v14 = vstv %s698_s24  ;;  %s1238_s24 = sshll.u32 %s1599_s13, 9 }
 0x385   : > { %v875_v17 = vmul.f32 %v872_v14, %v1707_v46  ;;  %v873_v21 = vmul.f32 %v872_v14, %v1701_v42  ;;  %v876_v25 = vmul.f32 %v872_v14, %v1710_v48  ;;  %s1830_s26 = scalar_lea.hbm %s1884_s9, %s1238_s24 }
 0x386   : > { %v681_v52 = vmul.f32 %v680_v49, %v669_v38  ;;  %v682_v53 = vmul.f32 %v680_v49, %v671_v39  ;;  %v683_v60 = vmul.f32 %v680_v49, %v673_v47 }
 0x387   : > { %v675_v54 = vpop.xlane.xlu1 %674 }
 0x388   : > { %v785_v55 = vmul.f32 %v781_v51, %v681_v52  ;;  %v786_v56 = vmul.f32 %v782_v50, %v682_v53  ;;  %v684_v63 = vmul.f32 %v680_v49, %v675_v54  ;;  %v787_v6 = vmul.f32 %v783_v62, %v683_v60 }
 0x38a   : > { %v789_v58 = vpack.c.bf16 %v786_v56, %v785_v55 }
 0x38b   : > { %v714_v59 = vpop.permute.xlu1 %713 }
 0x38c   : > { %v778_v61 = vadd.f32 %v1290_v29, %v714_v59  ;;  %1291 = vmatprep.subr.bf16.mxu0 %v789_v58  ;;  %v874_v29 = vmul.f32 %v872_v14, %v1703_v44 }
 0x38d   : > { %1292 = vmatpush3.bf16.msra.mxu0 %v789_v58 }
 0x38e   : > { %v784_v0 = vmax.f32 %v778_v61, 0.0 }
 0x38f   : > { %v793_v10 = vpop.permute.xlu1 %792 }
 0x390   : > { %v788_v7 = vmul.f32 %v784_v0, %v684_v63 }
 0x392   : > { %v790_v8 = vpack.c.bf16 %v788_v7, %v787_v6  ;;  %v937_v6 = vpop.permute.xlu0 %936 }
 0x393   : > { %v797_v11 = vpop.permute.xlu1 %796 }
 0x394   : > { %1293 = vmatprep.subr.bf16.mxu0 %v790_v8 }
 0x395   : > { %1294 = vmatpush3.bf16.msra.mxu0 %v790_v8 }
 0x396   : > { %1299 = vmatprep.subr.bf16.mxu0 %v1516_v12 }
 0x397   : > { %v801_v13 = vpop.permute.xlu1 %800 }
 0x398   : > { %1296 = vmatmul.mubr.msk.bf16.vlgmr.msra.gmra.mrb[8].mxu0 %vm584_vm7, %v1408_v9  ;;  %v929_v9 = vpop.permute.xlu0 %928 }
 0x399   : > { %1303 = vmatprep.mubr.msk.bf16.mxu0 %vm1517_vm2, %v1516_v12 }
 0x39b   : > { %v805_v19 = vpop.permute.xlu1 %804 }
 0x3a0   : > { %v917_v54 = vpop.permute.xlu1 %916 }
 0x3a4   : > { %v921_v58 = vpop.permute.xlu1 %920 }
 0x3a9   : > { %v941_v61 = vpop.permute.xlu1 %940 }
 0x3ae   : > { %v925_v0 = vpop.permute.xlu1 %924 }
 0x3b3   : > { %v945_v7 = vpop.permute.xlu1 %944 }
 0x3b7   : > { %v949_v14 = vpop.permute.xlu1 %948 }
 0x46b   : > { %v1297_v15 = vpop.f32.mrb[8].mxu0 }
 0x46c   : > { %v866_v16 = vadd.f32 %v1297_v15, %v801_v13  ;;  %v857_v18 = vpop.f32.mrb[9].mxu0 }
 0x46d   : > { %v858_v20 = vadd.f32 %v857_v18, %v793_v10  ;;  %v1298_v22 = vpop.f32.mrb[10].mxu0 }
 0x46e   : > { %v1780_v23 = vadd.f32 %v875_v17, %v866_v16  ;;  %v869_v24 = vadd.f32 %v1298_v22, %v805_v19  ;;  %v860_v26 = vpop.f32.mrb[11].mxu0 }
 0x46f   : > { %v1783_v27 = vadd.f32 %v873_v21, %v858_v20  ;;  %v861_v28 = vadd.f32 %v860_v26, %v797_v11  ;;  %v693_v26 = vld [vmem:[%s1880_s5] sm:$0xf] }
 0x470   : > { %v1786_v30 = vadd.f32 %v876_v25, %v869_v24 }
 0x471   : > { %v1788_v46 = vadd.f32 %v874_v29, %v861_v28  ;;  %v1409_v28 = vld [vmem:[%s1881_s6] sm:$0xff]   ;;  %v1524_v29 = vmov 9  }
 0x472   : > { %1309 = vmatprep.mubr.msk.bf16.mxu1 %vm384_vm0, %v1409_v28  ;;  %1398 = vset.pattern.permute.xlu1 %v1524_v29 }
 0x473   : > { %v881_v31 = vadd.f32 %v1788_v46, %v1783_v27  ;;  %1399 = vset.pattern.permute.xlu0 %v1524_v29  ;;  %1012 = vperm.xlu1 %1398, %v1652_v1  }
 0x474   : > { %1020 = vperm.xlu0 %1399, %v1657_v2  }
 0x475   : > { %v882_v42 = vadd.f32 %v881_v31, %v1780_v23 }
 0x477   : > { %v883_v32 = vadd.f32 %v882_v42, %v1786_v30  ;;  %1016 = vperm.xlu1 %1398, %v1663_v4  }
 0x479   : > { %v884_v33 = vrot.slane %v883_v32, 4 }
 0x47b   : > { %v885_v34 = vadd.f32 %v884_v33, %v883_v32  ;;  %1024 = vperm.xlu1 %1398, %v1669_v5   ;;  %v1410_v5 = vld [vmem:[%s1881_s6 + $0x8] sm:$0xff]  }
 0x47d   : > { %v886_v48 = vrot.slane %v885_v34, 2 }
 0x47f   : > { %v887_v35 = vadd.f32 %v886_v48, %v885_v34 }
 0x481   : > { %v888_v36 = vrot.slane %v887_v35, 1 }
 0x483   : > { %v889_v37 = vadd.f32 %v888_v36, %v887_v35 }
 0x485   : > { %v890_v38 = vmul.f32 0.03125, %v889_v37 }
 0x487   : > { %v892_v44 = vsub.f32 %v1788_v46, %v890_v38  ;;  %v893_v39 = vsub.f32 %v1780_v23, %v890_v38  ;;  %v894_v40 = vsub.f32 %v1786_v30, %v890_v38  ;;  %v891_v41 = vsub.f32 %v1783_v27, %v890_v38 }
 0x489   : > { %v896_v43 = vmul.f32 %v892_v44, %v892_v44  ;;  %v895_v45 = vmul.f32 %v891_v41, %v891_v41  ;;  %v897_v47 = vmul.f32 %v893_v39, %v893_v39  ;;  %v898_v50 = vmul.f32 %v894_v40, %v894_v40 }
 0x48b   : > { %v899_v49 = vadd.f32 %v896_v43, %v895_v45 }
 0x48d   : > { %v900_v51 = vadd.f32 %v899_v49, %v897_v47 }
 0x48f   : > { %v901_v52 = vadd.f32 %v900_v51, %v898_v50 }
 0x491   : > { %v902_v53 = vrot.slane %v901_v52, 4 }
 0x493   : > { %v903_v55 = vadd.f32 %v902_v53, %v901_v52 }
 0x495   : > { %v904_v56 = vrot.slane %v903_v55, 2 }
 0x497   : > { %v905_v57 = vadd.f32 %v904_v56, %v903_v55 }
 0x499   : > { %v906_v59 = vrot.slane %v905_v57, 1 }
 0x49b   : > { %v907_v60 = vadd.f32 %v906_v59, %v905_v57 }
 0x49d   : > { %v908_v62 = vmul.f32 0.03125, %v907_v60 }
 0x49f   : > { %v909_v63 = vadd.f32 1e-05, %v908_v62 }
 0x4a1   : > { %1425 = vrsqrt.f32 %v909_v63 }
 0x4ab   : > { %v1426_v8 = vpop.eup %1425 }
 0x4ac   : > { %v911_v3 = vmul.f32 %v1426_v8, %v891_v41  ;;  %v912_v10 = vmul.f32 %v1426_v8, %v892_v44  ;;  %v913_v11 = vmul.f32 %v1426_v8, %v893_v39  ;;  %v914_v13 = vmul.f32 %v1426_v8, %v894_v40 }
 0x4ad   : > { %v1095_v40 = vstv %s1218_s16  ;;  %s1450_s16 = scalar_lea.vmem %s1449_s29, 1024 }
 0x4ae   : > { %v931_v15 = vmul.f32 %v917_v54, %v911_v3  ;;  %v932_v16 = vmul.f32 %v921_v58, %v912_v10  ;;  %v933_v17 = vmul.f32 %v925_v0, %v913_v11  ;;  %v934_v18 = vmul.f32 %v929_v9, %v914_v13  ;;  %p1452_p0 = scmp.lt.s32.totalorder %s1450_s16, %s1444_s28 }
 0x4af   : > { %v1098_v45 = vmul.f32 %v1095_v40, %v1780_v23  ;;  %v1096_v50 = vmul.f32 %v1095_v40, %v1783_v27  ;;  %v1099_v55 = vmul.f32 %v1095_v40, %v1786_v30  ;;  %v1097_v23 = vmul.f32 %v1095_v40, %v1788_v46 }
 0x4b0   : > { %v952_v19 = vadd.f32 %v941_v61, %v932_v16  ;;  %v951_v20 = vadd.f32 %v937_v6, %v931_v15  ;;  %v953_v21 = vadd.f32 %v945_v7, %v933_v17  ;;  %v954_v22 = vadd.f32 %v949_v14, %v934_v18  ;;  %p1453_p1 = por %p1452_p0, %p1451_p13 }
 0x4b2   : > { %v955_v24 = vpack.c.bf16 %v952_v19, %v951_v20  ;;  %v956_v25 = vpack.c.bf16 %v954_v22, %v953_v21  ;;  %p1454_p2 = pnand %p1453_p1, %p1447_p12 }
 0x4b4   : > { %1300 = vmatpush3.bf16.msra.mxu0 %v955_v24 }
 0x4b5   : > { %1301 = vmatprep.subr.bf16.mxu0 %v1516_v12  ;;  %v959_v12 = vpop.permute.xlu0 %958 }
 0x4b8   : > { %1302 = vmatpush3.bf16.msra.mxu0 %v956_v25 }
 0x4bb   : > { %1304 = vmatmul.mubr.msk.bf16.vlgmr.msra.gmra.mrb[12].mxu0 %vm584_vm7, %v693_v26 }
 0x4f2   : > { %v1013_v38 = vpop.permute.xlu1 %1012 }
 0x4f3   : > { %v1021_v39 = vpop.permute.xlu0 %1020 }
 0x4f6   : > { %v1017_v44 = vpop.permute.xlu1 %1016 }
 0x4fa   : > { %v1025_v51 = vpop.permute.xlu1 %1024 }
 0x58e   : > { %v998_v31 = vpop.f32.mrb[12].mxu0 }
 0x58f   : > { %v999_v42 = vadd.f32 %v998_v31, %v959_v12  ;;  %v1305_v32 = vpop.f32.mrb[13].mxu0 }
 0x590   : > { %v1001_v33 = vpop.f32.mrb[14].mxu0 }
 0x591   : > { %v1005_v34 = vmin.f32 %v999_v42, 0.0  ;;  %v1306_v48 = vpop.f32.mrb[15].mxu0  ;;  %vm1004_vm9 = vcmp.gt.f32.partialorder %v999_v42, 0.0 }
 0x593   : > { %v1006_v35 = vmul.f32 1.442695, %v1005_v34 }
 0x595   : > { %1427 = vpow2.f32 %v1006_v35 }
 0x59f   : > { %v1428_v36 = vpop.eup %1427 }
 0x5a0   : > { %v1228_v37 = vadd.f32 -1.0, %v1428_v36 }
 0x5a2   : > { %v1009_v1 = vsel %vm1004_vm9, %v999_v42, %v1228_v37 }
 0x5a3   : > { %v1010_v2 = vpack.c.bf16 %v1009_v1, %v1009_v1 }
 0x5a5   : > { %1314 = vmatprep.subr.msk.bf16.mxu1 %vm391_vm1, %v1010_v2  ;;  %v1044_v4 = vsel %vm391_vm1, %v1010_v2, 0 }
 0x5a6   : > { %1308 = vmatpush3.bf16.msra.mxu1 %v1044_v4 }
 0x5a9   : > { %1310 = vmatmul.mubr.msk.bf16.vlgmr.msra.gmra.mrb[12].mxu1 %vm384_vm0, %v1410_v5 }
 0x67c   : > { %v1311_v41 = vpop.f32.mrb[12].mxu1 }
 0x67d   : > { %v1089_v43 = vadd.f32 %v1311_v41, %v1021_v39  ;;  %v1080_v47 = vpop.f32.mrb[13].mxu1 }
 0x67e   : > { %v1081_v49 = vadd.f32 %v1080_v47, %v1013_v38  ;;  %v1312_v52 = vpop.f32.mrb[14].mxu1 }
 0x67f   : > { %v1102_v53 = vadd.f32 %v1098_v45, %v1089_v43  ;;  %v1092_v54 = vadd.f32 %v1312_v52, %v1025_v51  ;;  %v1083_v56 = vpop.f32.mrb[15].mxu1 }
 0x680   : > { %v1100_v57 = vadd.f32 %v1096_v50, %v1081_v49  ;;  %v1084_v58 = vadd.f32 %v1083_v56, %v1017_v44 }
 0x681   : > { %1106 = vst [vmem:[%s337_s22 + $0x10] sm:$0xff] %v1102_v53  ;;  %v1103_v27 = vadd.f32 %v1099_v55, %v1092_v54 }
 0x682   : > { %1104 = vst [vmem:[%s337_s22] sm:$0xff] %v1100_v57  ;;  %v1101_v30 = vadd.f32 %v1097_v23, %v1084_v58 }
 0x683   : > { %1107 = vst [vmem:[%s337_s22 + $0x18] sm:$0xff] %v1103_v27 }
 0x684   : > { %1105 = vst [vmem:[%s337_s22 + $0x8] sm:$0xff] %v1101_v30 }
 0x685   : > { %1457 = shalt.err (!%p1454_p2)
}
 0x686   : > { %s1458_s17 = scalar_lea.hbm %s1830_s26, 512  ;;  %s1462_s24 = scalar_lea.hbm %s1884_s9, 1024 }
 0x687   : > { %p1459_p3 = scmp.ne.s32.totalorder %s1830_s26, %s1458_s17  ;;  %p1463_p8 = scmp.lt.u32.totalorder %s1830_s26, %s1884_s9 }
 0x688   : > { %p1464_p11 = scmp.lt.u32.totalorder %s1462_s24, %s1458_s17  ;;  %p1466_p10 = scmp.lt.u32.totalorder %s1458_s17, %s1830_s26 }
 0x689   : > { %p1460_p4 = pnand %p1459_p3, %p1616_p5 }
 0x68a   : > { %p1465_p9 = por %p1464_p11, %p1463_p8 }
 0x68b   : > { %p1461_p7 = pneg %p1460_p4 }
 0x68c   : > { %p1467_p12 = por %p1466_p10, %p1465_p9 }
 0x68e   : > { %p1468_p13 = pnand %p1467_p12, %p1461_p7 }
 0x690   : > { %1471 = shalt.err (!%p1468_p13)
}
 0x691   : > { %s1526_s28 = smov 128   ;;  %s1527_s14 = smov 8  }
 0x692   : > { %1319 = dma.vmem_to_hbm [thread:$0]  (%p1616_p5), %s1825_s23, 512, %s1830_s26, %s1834_s27, %s1526_s28, %s1526_s28, %s1527_s14  }
 0x693 PF: > { %p1331_p0 = scmp.ge.s32.totalorder %s1510_s12, 2  ;;  %s1137_s29 = sand.u32 1, %s1498_s30  }
 0x694   : > { %s1138_s16 = scalar_lea.sflag [#allocation3], %s1137_s29 }
 0x695   : > { %p1326_p1 = pnand %p1331_p0, %p1620_p6 }
 0x697   : > { %1493 = dma.done.wait (!%p1326_p1), %s1138_s16, 512  }
 0x698   : > { %1495 = vsyncadd (!%p1326_p1), %s1138_s16, 4294966784  ;;  %p20_p2 = scmp.ge.s32.totalorder %s1603_s15, 4   ;;  %s1888_s30 = smov %s1502_s10 }
 0x699   : > { %s1889_s10 = smov %s1506_s11  ;;  %s1890_s11 = smov %s1614_s18 }
 0x69a   : > { %s1891_s12 = smov %s1603_s15  ;;  %22 = sbr.rel (!%p20_p2) target bundleno = 4 (0x4), region = 96 }
 0x6a1   :  { %1143 = vsyncpa [#allocation3], 1 }
 0x6a2   :  { %1145 = vsyncpa [#allocation3 + $0x1], 1 }
 0x6a3   :  { %1146 = vsyncpa [#allocation4], 1 }
 0x6a4   :  { %1148 = vsyncpa [#allocation4 + $0x1], 1 }

</bundles_post_ra>
